<compile_context>
chip_gen: v7x
topology: tpu7x:2x2x1
jax: 0.10.0
libtpu: 0.0.40
codegen_flags: <defaults>
</compile_context>

<pallas_src>
import functools

import jax
import jax.numpy as jnp
from jax.experimental import pallas as pl
from jax.experimental.pallas import tpu as pltpu


def deeppink_kernel(x_ref, w1_ref, b1_ref, w2_ref, b2_ref, out_ref):
    """One batch tile.

    x_ref  : (TM, 2N)  batch (sublanes) x interleaved (feature, tap) (lanes)
    w1_ref : (2N, H)   first Linear with lc1/lc2 affine folded in
    b1_ref : (1, H)
    w2_ref : (1, H)    second Linear (output width 1) laid out as a row
    b2_ref : (1, 1)
    out_ref: (TM, 1)
    """
    x = x_ref[...].astype(jnp.float32)            # no-op for f32, VPU upcast for bf16
    h = jnp.dot(x, w1_ref[...], preferred_element_type=jnp.float32) + b1_ref[...]
    h = jnp.maximum(h, 0.0)                       # (TM, H)
    # Width-1 head: VPU multiply + XLU lane reduce (slack slots), no 1-wide MXU op.
    out_ref[...] = jnp.sum(h * w2_ref[...], axis=1, keepdims=True) + b2_ref[...]


def _round_up(x, m):
    return ((x + m - 1) // m) * m


@functools.partial(jax.jit, static_argnames=("block_b",))
def deeppink_forward(x_bnk, lc1_w, lc1_b, lc2_w, lc2_b, W1, b1, W2, b2,
                     *, block_b=None):
    """DeepPINK forward: X (B, n_input, 2) -> (B, 1).  X may be f32 or bf16."""
    B, N, K = x_bnk.shape
    assert K == 2
    H = W1.shape[1]
    f32 = jnp.float32
    two_n = 2 * N

    # ---- Fold lc1 (k=2) and lc2 (k=1) into the first Linear.  This is exact
    # (no nonlinearity between them in the spec module); params are tiny.
    lc2_col = lc2_w[:, 0].astype(f32)
    a0 = lc1_w[:, 0].astype(f32) * lc2_col                       # (N,)
    a1 = lc1_w[:, 1].astype(f32) * lc2_col                       # (N,)
    c = lc1_b.astype(f32) * lc2_col + lc2_b.astype(f32)          # (N,)

    W1f = W1.astype(f32)                                         # (N, H)
    w1p = jnp.stack([a0[:, None] * W1f, a1[:, None] * W1f],
                    axis=1).reshape(two_n, H)                    # (2N, H)
    b1p = (b1.astype(f32) + c @ W1f).reshape(1, H)
    w2r = W2.astype(f32).reshape(1, H)
    b2r = b2.astype(f32).reshape(1, 1)

    # ---- X in native layout: contiguous reshape only, no HBM transpose/pad pass.
    x2 = x_bnk.reshape(B, two_n)
    itemsize = x2.dtype.itemsize
    # VMEM footprint per row (lane dim padded to 128 inside VMEM tiles).
    vrow_x = _round_up(two_n, 128) * itemsize
    vrow_o = 128 * 4

    # ---- Batch tile: sized by bytes (not a fixed 512), >=2 steps for large
    # batches (v7x megacore), never padded past the real batch.
    if block_b is not None:
        tm = max(8, (block_b // 8) * 8)
    else:
        target = 6 << 20                              # ~6 MiB per X buffer
        tm = max(8, min(8192, (target // max(vrow_x, 1)) // 8 * 8))
        if B >= 256:                                  # ensure both v7x TCs get work
            tm = min(tm, _round_up(-(-B // 2), 8))
    if tm >= B:
        tm = B                                        # single step, full-array block
    grid = (pl.cdiv(B, tm),)                          # last block may be partial

    # ---- Explicit VMEM budget: double-buffered X + out blocks + resident params.
    # TODO(synk): for n_input*H large enough that w1p itself nears the VMEM
    # budget, add an "arbitrary" feature-tile grid axis with a VMEM accumulator.
    est = (2 * tm * vrow_x + 2 * tm * vrow_o
           + 2 * (w1p.size + b1p.size + w2r.size + b2r.size) * 4)
    vmem_limit = int(min(48 << 20, max(32 << 20, 2 * est)))

    out = pl.pallas_call(
        deeppink_kernel,
        out_shape=jax.ShapeDtypeStruct((B, 1), f32),
        grid_spec=pl.GridSpec(
            grid=grid,
            in_specs=[
                pl.BlockSpec((tm, two_n), lambda i: (i, 0)),      # X tile (streamed)
                pl.BlockSpec((two_n, H), lambda i: (0, 0)),       # params: constant
                pl.BlockSpec((1, H), lambda i: (0, 0)),           #   index maps ->
                pl.BlockSpec((1, H), lambda i: (0, 0)),           #   VMEM-resident
                pl.BlockSpec((1, 1), lambda i: (0, 0)),
            ],
            out_specs=pl.BlockSpec((tm, 1), lambda i: (i, 0)),
        ),
        compiler_params=pltpu.CompilerParams(
            dimension_semantics=("parallel",),
            vmem_limit_bytes=vmem_limit),
    )(x2, w1p, b1p, w2r, b2r)
    return out


def _reference(x_bnk, lc1_w, lc1_b, lc2_w, lc2_b, W1, b1, W2, b2):
    """Pure-JAX mirror of the PyTorch forward (correctness check only)."""
    y = jnp.sum(x_bnk * lc1_w[None, :, :], axis=2) + lc1_b[None, :]          # lc1
    y = jnp.sum(y[:, :, None] * lc2_w[None, :, :], axis=2) + lc2_b[None, :]  # lc2
    h = jnp.maximum(y @ W1 + b1[None, :], 0.0)
    return h @ W2 + b2[None, :]


if __name__ == "__main__":
    # TODO(synk): the wrapped `model` is an arbitrary nn.Module in the spec; it is
    # represented here by the canonical Linear(N,H) -> ReLU -> Linear(H,1) MLP head.
    B, N, H = 2, 16, 32   # batch, n_input, hidden width of the synthetic model

    key = jax.random.PRNGKey(0)
    kx, klc2, kw1, kw2, kx2 = jax.random.split(key, 5)

    # Input, PyTorch convention (B, n_input, kernel=2)
    x = jax.random.normal(kx, (B, N, 2), jnp.float32)

    # lc1: weight filled with 0.1, bias zeros (LocallyConnected1d.init_weights)
    lc1_w = jnp.full((N, 2), 0.1, jnp.float32)
    lc1_b = jnp.zeros((N,), jnp.float32)
    # lc2: xavier_normal_ on (n_input, 1): std = sqrt(2 / (fan_in + fan_out))
    xav_std = (2.0 / (N + 1.0)) ** 0.5
    lc2_w = jax.random.normal(klc2, (N, 1), jnp.float32) * xav_std
    lc2_b = jnp.zeros((N,), jnp.float32)

    # Synthetic wrapped model, weights stored as (in, out) = torch weight.T.
    W1 = jax.random.normal(kw1, (N, H), jnp.float32) / jnp.sqrt(jnp.float32(N))
    b1 = jnp.zeros((H,), jnp.float32)
    W2 = jax.random.normal(kw2, (H, 1), jnp.float32) / jnp.sqrt(jnp.float32(H))
    b2 = jnp.zeros((1,), jnp.float32)

    params = (lc1_w, lc1_b, lc2_w, lc2_b, W1, b1, W2, b2)

    # 1) Basic f32 path, single full-batch step.
    out = jax.block_until_ready(deeppink_forward(x, *params))
    ref = _reference(x, *params)
    assert out.shape == (B, 1), out.shape
    assert jnp.allclose(out, ref, atol=1e-4, rtol=1e-4), (out, ref)

    # 2) Tiled path with a partial last block (batch not a multiple of the tile).
    B2 = 20
    xb = jax.random.normal(kx2, (B2, N, 2), jnp.float32)
    out2 = jax.block_until_ready(deeppink_forward(xb, *params, block_b=8))
    ref2 = _reference(xb, *params)
    assert out2.shape == (B2, 1), out2.shape
    assert jnp.allclose(out2, ref2, atol=1e-4, rtol=1e-4), (out2, ref2)

    # 3) bf16 X streaming path (halves the dominant HBM stream; f32 compute).
    xb16 = xb.astype(jnp.bfloat16)
    out3 = jax.block_until_ready(deeppink_forward(xb16, *params))
    ref3 = _reference(xb16.astype(jnp.float32), *params)
    assert jnp.allclose(out3, ref3, atol=1e-4, rtol=1e-4), (out3, ref3)

    print("KERNEL_OK")
</pallas_src>

<mosaic_0001>
module attributes {stable_mosaic.version = 11 : i64} {
  func.func @deeppink_kernel(%arg0: i32, %arg1: memref<2x32xf32, #tpu.memory_space<vmem>>, %arg2: memref<32x32xf32, #tpu.memory_space<vmem>>, %arg3: memref<1x32xf32, #tpu.memory_space<vmem>>, %arg4: memref<1x32xf32, #tpu.memory_space<vmem>>, %arg5: memref<1x1xf32, #tpu.memory_space<vmem>>, %arg6: memref<2x1xf32, #tpu.memory_space<vmem>>) attributes {dimension_semantics = [#tpu.dimension_semantics<parallel>], iteration_bounds = array<i64: 1>, scalar_prefetch = 0 : i64, scratch_operands = 0 : i64, tpu.core_type = #tpu.core_type<tc>, window_params = [{transform_indices = @transform_0, window_bounds = array<i64: 2, 32>}, {pipeline_mode = #tpu.pipeline_mode<synchronous>, transform_indices = @transform_1, window_bounds = array<i64: 32, 32>}, {pipeline_mode = #tpu.pipeline_mode<synchronous>, transform_indices = @transform_2, window_bounds = array<i64: 1, 32>}, {pipeline_mode = #tpu.pipeline_mode<synchronous>, transform_indices = @transform_3, window_bounds = array<i64: 1, 32>}, {pipeline_mode = #tpu.pipeline_mode<synchronous>, transform_indices = @transform_4, window_bounds = array<i64: 1, 1>}, {transform_indices = @transform_5, window_bounds = array<i64: 2, 1>}]} {
    %c0 = arith.constant 0 : index
    %c0_0 = arith.constant 0 : index
    %0 = vector.load %arg1[%c0, %c0_0] : memref<2x32xf32, #tpu.memory_space<vmem>>, vector<2x32xf32>
    %c0_1 = arith.constant 0 : index
    %c0_2 = arith.constant 0 : index
    %1 = vector.load %arg2[%c0_1, %c0_2] : memref<32x32xf32, #tpu.memory_space<vmem>>, vector<32x32xf32>
    %cst = arith.constant dense<0.000000e+00> : vector<2x32xf32>
    %2 = tpu.matmul %0, %1, %cst {dimension_numbers = #tpu.dot_dimension_numbers<[1], [0], [0], [1], [0, 0, 1, 1], [], []>} : vector<2x32xf32>, vector<32x32xf32>, vector<2x32xf32> -> vector<2x32xf32>
    %c0_3 = arith.constant 0 : index
    %c0_4 = arith.constant 0 : index
    %3 = vector.load %arg3[%c0_3, %c0_4] : memref<1x32xf32, #tpu.memory_space<vmem>>, vector<1x32xf32>
    %4 = vector.broadcast %3 : vector<1x32xf32> to vector<2x32xf32>
    %5 = arith.addf %2, %4 : vector<2x32xf32>
    %cst_5 = arith.constant 0.000000e+00 : f32
    %6 = vector.broadcast %cst_5 : f32 to vector<2x32xf32>
    %7 = arith.maximumf %5, %6 : vector<2x32xf32>
    %c0_6 = arith.constant 0 : index
    %c0_7 = arith.constant 0 : index
    %8 = vector.load %arg4[%c0_6, %c0_7] : memref<1x32xf32, #tpu.memory_space<vmem>>, vector<1x32xf32>
    %9 = vector.broadcast %8 : vector<1x32xf32> to vector<2x32xf32>
    %10 = arith.mulf %7, %9 : vector<2x32xf32>
    %cst_8 = arith.constant dense<0.000000e+00> : vector<2xf32>
    %11 = vector.multi_reduction <add>, %10, %cst_8 [1] : vector<2x32xf32> to vector<2xf32>
    %12 = vector.shape_cast %11 : vector<2xf32> to vector<2x1xf32>
    %c0_9 = arith.constant 0 : index
    %c0_10 = arith.constant 0 : index
    %13 = vector.load %arg5[%c0_9, %c0_10] : memref<1x1xf32, #tpu.memory_space<vmem>>, vector<1x1xf32>
    %14 = vector.broadcast %13 : vector<1x1xf32> to vector<2x1xf32>
    %15 = arith.addf %12, %14 : vector<2x1xf32>
    %c0_11 = arith.constant 0 : index
    %c0_12 = arith.constant 0 : index
    %16 = vector.load %arg6[%c0_11, %c0_12] : memref<2x1xf32, #tpu.memory_space<vmem>>, vector<2x1xf32>
    tpu.vector_store %arg6[%c0_11, %c0_12], %15 {strides = array<i32>} : memref<2x1xf32, #tpu.memory_space<vmem>>, vector<2x1xf32>,
    return
  }
  func.func @transform_0(%arg0: i32) -> (i32, i32) {
    %c0_i32 = arith.constant 0 : i32
    %c0_i32_0 = arith.constant 0 : i32
    return %arg0, %c0_i32 : i32, i32
  }
  func.func @transform_1(%arg0: i32) -> (i32, i32) {
    %c0_i32 = arith.constant 0 : i32
    %c0_i32_0 = arith.constant 0 : i32
    %c0_i32_1 = arith.constant 0 : i32
    return %c0_i32, %c0_i32_0 : i32, i32
  }
  func.func @transform_2(%arg0: i32) -> (i32, i32) {
    %c0_i32 = arith.constant 0 : i32
    %c0_i32_0 = arith.constant 0 : i32
    %c0_i32_1 = arith.constant 0 : i32
    return %c0_i32, %c0_i32_0 : i32, i32
  }
  func.func @transform_3(%arg0: i32) -> (i32, i32) {
    %c0_i32 = arith.constant 0 : i32
    %c0_i32_0 = arith.constant 0 : i32
    %c0_i32_1 = arith.constant 0 : i32
    return %c0_i32, %c0_i32_0 : i32, i32
  }
  func.func @transform_4(%arg0: i32) -> (i32, i32) {
    %c0_i32 = arith.constant 0 : i32
    %c0_i32_0 = arith.constant 0 : i32
    %c0_i32_1 = arith.constant 0 : i32
    return %c0_i32, %c0_i32_0 : i32, i32
  }
  func.func @transform_5(%arg0: i32) -> (i32, i32) {
    %c0_i32 = arith.constant 0 : i32
    %c0_i32_0 = arith.constant 0 : i32
    return %arg0, %c0_i32 : i32, i32
  }
}

</mosaic_0001>

<bundles_post_ra>
// kernel: deeppink_forward.1
= control target key start
LH: loop header
LB: loop body
LE: loop exit
PB: predicated region body
PF: predicated region fallthrough
CT: control target
= control target key end

     0   :  { %v164_v0 = vmov 0.0|0.0   ;;  %vm165_vm0 = vmmov 0   ;;  %v166_v4 = vmov 0.0   ;;  %vm34_vm1 = vcmask 261120   ;;  %s224_s1 = inlined_call_operand.vmem [shape: f32[32,32], index: 1, kind: input, shape index: {}]   ;;  %s225_s0 = inlined_call_operand.vmem [shape: f32[2,32], index: 0, kind: input, shape index: {}]   ;;  %s226_s4 = inlined_call_operand.<no memory space> [shape: f32[1,1], index: 4, kind: input, shape index: {}]   ;;  %s227_s2 = inlined_call_operand.vmem [shape: f32[1,32], index: 2, kind: input, shape index: {}]   ;;  %s228_s3 = inlined_call_operand.vmem [shape: f32[1,32], index: 3, kind: input, shape index: {}]   ;;  %s229_s5 = inlined_call_operand.vmem [shape: f32[2,1], index: 5, kind: output, shape index: {}]  }
   0x1   :  { %155 = vmatprep.subr.bf16.mxu0 %v164_v0  ;;  %v23_v1 = vld [vmem:[%s224_s1] sm:$0xff]  ;;  %v24_v2 = vld [vmem:[%s224_s1 + $0x8] sm:$0xff]  ;;  %v25_v3 = vld [vmem:[%s224_s1 + $0x10] sm:$0xff]  ;;  %152 = vmatprep.mubr.msk.f32.mxu0 %vm165_vm0, %v166_v4  ;;  %v10_v9 = vstv %s226_s4  ;;  %vm117_vm2 = vcmask 254976   ;;  %vm129_vm3 = vcmask 1024  }
   0x2   :  { %v156_v5 = vpack.c.bf16 %v24_v2, %v23_v1  ;;  %v26_v6 = vld [vmem:[%s224_s1 + $0x18] sm:$0xff]  ;;  %v22_v8 = vld [vmem:[%s225_s0] sm:$0x3]  ;;  %11 = vst [vmem:[#allocation2] sm:$0x1] %v10_v9 }
   0x3   :  { %v159_v7 = vpack.c.bf16 %v26_v6, %v25_v3  ;;  %v135_v10 = vld [vmem:[%s227_s2] ss:$0 sm:$0xff] }
   0x4   :  { %157 = vmatpush3.bf16.msra.mxu0 %v156_v5  ;;  %v137_v14 = vld [vmem:[%s228_s3] ss:$0 sm:$0xff] }
   0x5   :  { %158 = vmatprep.subr.bf16.mxu0 %v164_v0 }
   0x8   :  { %160 = vmatpush3.bf16.msra.mxu0 %v159_v7 }
   0x9   :  { %v138_v18 = vld [vmem:[#allocation2] ss:$0 sm:$0xff] }
   0xb   :  { %153 = vmatmul.mubr.msk.f32.vlgmr.msra.gmra.mrb[0].mxu0 %vm34_vm1, %v22_v8 }
  0xde   :  { %v104_v11 = vpop.f32.mrb[0].mxu0 }
  0xdf   :  { %v105_v12 = vadd.f32 %v135_v10, %v104_v11  ;;  %v154_v13 = vpop.f32.mrb[1].mxu0 }
  0xe1   :  { %v108_v15 = vmax.f32 %v105_v12, 0.0 }
  0xe3   :  { %v116_v16 = vmul.f32 %v137_v14, %v108_v15 }
  0xe5   :  { %v118_v17 = vsel %vm117_vm2, %v116_v16, 0.0 }
  0xe6   :  { %119 = vadd.xlane.f32.xlu0 %v118_v17 }
 0x173   :  { %v120_v19 = vpop.xlane.xlu0 %119 }
 0x174   :  { %v128_v20 = vadd.f32 %v138_v18, %v120_v19 }
 0x176   :  { %130 = vst.msk [vmem:[%s229_s5] sm:$0x3] %vm129_vm3, %v128_v20 }

</bundles_post_ra>
